<compile_context>
chip_gen: v7x
topology: tpu7x:2x2x1
jax: 0.10.0
libtpu: 0.0.40
codegen_flags: <defaults>
</compile_context>

<pallas_src>
import functools

import jax
import jax.numpy as jnp
from jax.experimental import pallas as pl
from jax.experimental.pallas import tpu as pltpu

EPS = 1e-5  # nn.GroupNorm default eps


# ---------------------------------------------------------------------------
# pltpu.roll sign-convention probe (cached, one tiny kernel per process) so the
# depthwise taps are correct under either rotation convention of the installed
# jax.  Kept for correctness; it runs exactly once thanks to lru_cache.
# ---------------------------------------------------------------------------
@functools.lru_cache(maxsize=None)
def _roll_is_forward() -> bool:
    """True iff pltpu.roll(x, s, ax)[..., i] == x[..., (i - s) % n] (np.roll)."""
    def probe(x_ref, o_ref):
        o_ref[...] = pltpu.roll(x_ref[...], 1, 1)

    x = jax.lax.broadcasted_iota(jnp.float32, (8, 128), 1)
    y = pl.pallas_call(
        probe, out_shape=jax.ShapeDtypeStruct((8, 128), jnp.float32))(x)
    if bool(jnp.array_equal(y, jnp.roll(x, 1, axis=1))):
        return True
    if bool(jnp.array_equal(y, jnp.roll(x, -1, axis=1))):
        return False
    raise RuntimeError("unexpected pltpu.roll semantics")


@functools.lru_cache(maxsize=None)
def _chip_hints():
    """Returns (cores a 'parallel' grid axis can span, VMEM budget, VMEM limit)."""
    try:
        kind = jax.devices()[0].device_kind.lower()
    except Exception:
        kind = ""
    single_core = any(t in kind for t in ("lite", "v5e", "v6e", "v2", "v3"))
    dual_core = (not single_core) and any(t in kind for t in ("v4", "v5p", "v7", "7x"))
    small_vmem = any(t in kind for t in ("v7", "7x"))       # 64 MiB/TC vs 128 MiB
    n_cores = 2 if dual_core else 1
    budget = (12 << 20) if small_vmem else (24 << 20)       # accounted per-step set
    limit = (36 << 20) if small_vmem else (48 << 20)        # scoped-VMEM ceiling
    return n_cores, budget, limit


def _pick_batch_block(batch, per_sample_bytes, budget_bytes, n_cores):
    """Largest batch block that divides the batch and fits the VMEM budget.

    Single-TC chips (v5e/v6e): prefer one big grid step (bt == batch); extra steps
    only add per-step pipeline overhead.  Multi-TC chips (v4/v5p/v7x): prefer a
    grid length divisible by the core count so both TensorCores stay busy.
    """
    divisors = sorted((d for d in range(1, batch + 1) if batch % d == 0),
                      reverse=True)
    fit = [d for d in divisors if d * per_sample_bytes <= budget_bytes] or [1]
    if n_cores > 1:
        spread = [d for d in fit if (batch // d) % n_cores == 0]
        if spread:
            return spread[0]
    return fit[0]


def _inv_res_kernel(x_ref, w1_ref, g1_ref, b1_ref,
                    wdw_ref, bdw_ref, g2_ref, b2_ref,
                    w3_ref, g3_ref, b3_ref, out_ref,
                    *, H, W, roll_fwd, use_res,
                    mxu_expand, mxu_project, dw_vectorized, n_acc):
    bt, c_in, HW = x_ref.shape
    c_out = out_ref.shape[1]
    c_b = g1_ref.shape[0]

    # Tiny parameters: load once per grid step.
    w1 = w1_ref[...]
    w3 = w3_ref[...]
    wdw = wdw_ref[...]
    g1, b1 = g1_ref[...], b1_ref[...]
    g2, b2 = g2_ref[...], b2_ref[...]
    g3, b3 = g3_ref[...], b3_ref[...]
    bdw = bdw_ref[...]

    # Whole batch block at once: (bt, C, H*W), lane-dense on H*W.
    x = x_ref[...]

    # ---- helpers (close over per-step constants; hoisted out of any loop) ----
    def mac(t, w, n_parts):
        """Per-pixel channel mix t:(bt,Ci,HW) x w:(Ci,Co,1) -> (bt,Co,HW) on the VPU.

        Split into n_parts independent accumulator chains + a pairwise tree sum so
        the 4 VALU slots see ILP instead of one serial dependency chain.
        """
        ci = t.shape[1]
        n_parts = max(1, min(n_parts, ci))
        parts = []
        for a in range(n_parts):
            acc = t[:, a:a + 1, :] * w[a]
            for c in range(a + n_parts, ci, n_parts):
                acc = acc + t[:, c:c + 1, :] * w[c]
            parts.append(acc)
        while len(parts) > 1:
            nxt = [parts[i] + parts[i + 1] for i in range(0, len(parts) - 1, 2)]
            if len(parts) % 2:
                nxt.append(parts[-1])
            parts = nxt
        return parts[0]

    def gn(t, gamma, beta, *, lrelu):
        """GroupNorm(num_groups=1) per sample; two-pass statistics (mean, then
        centered sum of squares) for numerical robustness, fused scale+shift,
        optional LeakyReLU(0.2) as max(y, 0.2*y)."""
        n = t.shape[1] * t.shape[2]
        mean = jnp.sum(t, axis=(1, 2), keepdims=True) * (1.0 / n)      # (bt,1,1)
        d = t - mean
        var = jnp.sum(d * d, axis=(1, 2), keepdims=True) * (1.0 / n)   # (bt,1,1)
        y = d * (gamma * jax.lax.rsqrt(var + EPS)) + beta              # one FMA pass
        return jnp.maximum(y, 0.2 * y) if lrelu else y

    def rot_pair(t, s):
        """(p, m): p[..., i] = t[..., (i+s) % HW]; m[..., i] = t[..., (i-s) % HW]."""
        a = pltpu.roll(t, s % HW, 1)
        b = pltpu.roll(t, (-s) % HW, 1)
        return (b, a) if roll_fwd else (a, b)

    # Boundary masks of ReflectionPad2d(1) on the flattened H*W lane axis.
    pos = jax.lax.broadcasted_iota(jnp.int32, (1, HW), 1)
    col = pos % W
    row = pos // W
    not_first_col = col > 0
    not_last_col = col < (W - 1)
    not_first_row = row > 0
    not_last_row = row < (H - 1)

    def depthwise3x3_reflect(t, w):
        """3x3 depthwise conv with reflect padding on t:(R, HW); w:(3,3,R(or Cb),1).

        Column taps (with their boundary reflection) are built once and pre-combined
        with the per-row weights BEFORE the row shifts (row reflection is independent
        of the column index), so only 6 XLU rolls and 4 whole-array selects are
        needed instead of 8 + 8 for the naive nesting.
        """
        p1, m1 = rot_pair(t, 1)
        left = jnp.where(not_first_col, m1, p1)     # tap (h, w-1), reflected at w = 0
        right = jnp.where(not_last_col, p1, m1)     # tap (h, w+1), reflected at w = W-1
        up = left * w[0, 0] + t * w[0, 1] + right * w[0, 2]    # sampled at row h-1
        mid = left * w[1, 0] + t * w[1, 1] + right * w[1, 2]
        dn = left * w[2, 0] + t * w[2, 1] + right * w[2, 2]    # sampled at row h+1
        p_u, m_u = rot_pair(up, W)
        p_d, m_d = rot_pair(dn, W)
        return (jnp.where(not_first_row, m_u, p_u) + mid
                + jnp.where(not_last_row, p_d, m_d))

    # ---- 1x1 expand conv + GroupNorm + LeakyReLU (whole batch block) ----------
    if mxu_expand:       # realistic channel counts -> MXU matmul
        h1 = jnp.einsum('oc,bcl->bol', w1, x, preferred_element_type=jnp.float32)
    else:                # tiny channel counts -> VPU broadcast-MAC
        h1 = mac(x, w1, n_acc)
    h1 = gn(h1, g1, b1, lrelu=True)                 # (bt, Cb, HW)
    # NOTE: on v6e/v7x h1/h2 could be carried in bf16 (f32 GN stats) to halve the
    # intermediate footprint; kept f32 here so v5e stays safe and numerics tight.

    # ---- 3x3 depthwise conv (ReflectionPad2d(1)) + bias + GN + LeakyReLU ------
    if dw_vectorized:
        # Cb % 8 == 0: (bt, Cb, HW) <-> (bt*Cb, HW) views are layout-identical, so
        # the whole batch block goes through the rolls in one shot (weights are
        # pre-tiled over the batch block in the wrapper).
        acc = depthwise3x3_reflect(h1.reshape(bt * c_b, HW), wdw)
        acc = acc.reshape(bt, c_b, HW)
    else:
        # TODO(synk): odd bottleneck widths (Cb % 8 != 0) use a per-sample unroll to
        # avoid non-tile-aligned reshapes; a padded-channel fast path could
        # batch-vectorize this case as well.
        acc = jnp.stack([depthwise3x3_reflect(h1[b], wdw) for b in range(bt)], axis=0)
    h2 = gn(acc + bdw, g2, b2, lrelu=True)          # (bt, Cb, HW)

    # ---- 1x1 project conv + GroupNorm (+ residual) ------------------------------
    if mxu_project:
        h3 = jnp.einsum('oc,bcl->bol', w3, h2, preferred_element_type=jnp.float32)
    else:
        h3 = mac(h2, w3, n_acc)
    h3 = gn(h3, g3, b3, lrelu=False)                # (bt, Cout, HW)

    if use_res:
        h3 = h3 + x
    out_ref[...] = h3


def inverted_res_block(x_nchw, params, *, use_res=None):
    """Forward pass of InvertedResBlock (expansion_ratio != 1).

    x_nchw: (B, Cin, H, W) float32 in PyTorch NCHW layout.
    params: PyTorch-layout parameters (see make_params).
    """
    (w1, g1, b1, wdw, bdw, g2, b2, w3, g3, b3) = params
    B, Cin, H, W = x_nchw.shape
    if H < 2 or W < 2:
        raise ValueError("ReflectionPad2d(1) requires H >= 2 and W >= 2")
    Cb = w1.shape[0]
    Cout = w3.shape[0]
    if use_res is None:
        use_res = (Cin == Cout)
    HW = H * W

    n_cores, vmem_budget, vmem_limit = _chip_hints()
    # Per-sample VMEM working set (f32): double-buffered in/out blocks plus about
    # ten live (Cb, HW) bottleneck intermediates (taps, row combos, h1/h2/h3, GN temp).
    per_sample_bytes = 4 * HW * (2 * Cin + 2 * Cout + 10 * Cb)
    bt = _pick_batch_block(B, per_sample_bytes, vmem_budget, n_cores)
    # TODO(synk): for very large H*W (real image resolutions) add an HW grid axis
    # with a one-row halo and a two-pass GroupNorm so single-shot tiles stay in VMEM.

    # NCHW -> (B, C, H*W): identical memory layout (free reshape); H*W (a multiple
    # of 128 here) lands on the lane axis with no transpose / extra HBM round trip.
    x = x_nchw.astype(jnp.float32).reshape(B, Cin, HW)

    mxu_expand = min(Cin, Cb) >= 64        # 1x1 convs go to the MXU once channels
    mxu_project = min(Cb, Cout) >= 64      # are large enough to fill a tile
    dw_vectorized = (Cb % 8 == 0)          # batch-vectorized depthwise path

    # Repack the (tiny) parameters into broadcast-ready shapes.
    w1m = w1[:, :, 0, 0]                                            # (Cb, Cin)
    w3m = w3[:, :, 0, 0]                                            # (Cout, Cb)
    w1k = w1m if mxu_expand else jnp.transpose(w1m)[:, :, None]     # (Cin, Cb, 1)
    w3k = w3m if mxu_project else jnp.transpose(w3m)[:, :, None]    # (Cb, Cout, 1)
    wdw_cc = jnp.transpose(wdw[:, 0, :, :], (1, 2, 0))              # (3, 3, Cb)
    if dw_vectorized:
        wdw_cc = jnp.tile(wdw_cc, (1, 1, bt))                       # (3, 3, bt*Cb)
    wdwk = wdw_cc[..., None]
    g1k, b1k = g1.reshape(Cb, 1), b1.reshape(Cb, 1)
    g2k, b2k = g2.reshape(Cb, 1), b2.reshape(Cb, 1)
    bdwk = bdw.reshape(Cb, 1)
    g3k, b3k = g3.reshape(Cout, 1), b3.reshape(Cout, 1)

    full = lambda a: pl.BlockSpec(a.shape, lambda i, _r=a.ndim: (0,) * _r)

    kernel = functools.partial(
        _inv_res_kernel, H=H, W=W, roll_fwd=_roll_is_forward(), use_res=use_res,
        mxu_expand=mxu_expand, mxu_project=mxu_project,
        dw_vectorized=dw_vectorized, n_acc=4)

    # Advisory cost estimate for the XLA scheduler around the custom call.
    flops = int(B * HW * (2 * Cin * Cb + 18 * Cb + 2 * Cb * Cout
                          + 10 * (2 * Cb + Cout)))
    bytes_accessed = int(4 * (x.size + B * Cout * HW + w1k.size + wdwk.size
                              + w3k.size + 6 * Cb + 2 * Cout))

    out = pl.pallas_call(
        kernel,
        out_shape=jax.ShapeDtypeStruct((B, Cout, HW), jnp.float32),
        grid_spec=pltpu.PrefetchScalarGridSpec(
            num_scalar_prefetch=0,
            grid=(B // bt,),
            in_specs=[
                pl.BlockSpec((bt, Cin, HW), lambda i: (i, 0, 0)),
                full(w1k), full(g1k), full(b1k),
                full(wdwk), full(bdwk), full(g2k), full(b2k),
                full(w3k), full(g3k), full(b3k),
            ],
            out_specs=pl.BlockSpec((bt, Cout, HW), lambda i: (i, 0, 0)),
        ),
        compiler_params=pltpu.CompilerParams(
            dimension_semantics=("parallel",),
            vmem_limit_bytes=int(vmem_limit)),
        cost_estimate=pl.CostEstimate(
            flops=flops, transcendentals=3 * B, bytes_accessed=bytes_accessed),
    )(x, w1k, g1k, b1k, wdwk, bdwk, g2k, b2k, w3k, g3k, b3k)

    # (B, Cout, H*W) -> NCHW, again a free reshape.
    return out.reshape(B, Cout, H, W)


def make_params(key, in_ch, out_ch, expansion_ratio=2):
    """PyTorch-layout parameters of InvertedResBlock (expansion_ratio != 1)."""
    bottleneck = int(round(in_ch * expansion_ratio))
    ks = jax.random.split(key, 10)
    s = 0.1
    w1 = s * jax.random.normal(ks[0], (bottleneck, in_ch, 1, 1), jnp.float32)   # 1x1 expand (OIHW)
    g1 = 1.0 + s * jax.random.normal(ks[1], (bottleneck,), jnp.float32)
    b1 = s * jax.random.normal(ks[2], (bottleneck,), jnp.float32)
    wdw = s * jax.random.normal(ks[3], (bottleneck, 1, 3, 3), jnp.float32)      # depthwise 3x3
    bdw = s * jax.random.normal(ks[4], (bottleneck,), jnp.float32)
    g2 = 1.0 + s * jax.random.normal(ks[5], (bottleneck,), jnp.float32)
    b2 = s * jax.random.normal(ks[6], (bottleneck,), jnp.float32)
    w3 = s * jax.random.normal(ks[7], (out_ch, bottleneck, 1, 1), jnp.float32)  # 1x1 project
    g3 = 1.0 + s * jax.random.normal(ks[8], (out_ch,), jnp.float32)
    b3 = s * jax.random.normal(ks[9], (out_ch,), jnp.float32)
    return (w1, g1, b1, wdw, bdw, g2, b2, w3, g3, b3)


def reference_forward(x, params, use_res):
    """Pure-JAX (non-Pallas) reference matching the PyTorch module."""
    (w1, g1, b1, wdw, bdw, g2, b2, w3, g3, b3) = params

    def gn(t, g, b):
        m = jnp.mean(t, axis=(1, 2, 3), keepdims=True)
        v = jnp.mean((t - m) ** 2, axis=(1, 2, 3), keepdims=True)
        t = (t - m) / jnp.sqrt(v + EPS)
        return t * g[None, :, None, None] + b[None, :, None, None]

    lrelu = lambda t: jnp.where(t >= 0, t, 0.2 * t)

    h = jnp.einsum('bchw,dc->bdhw', x, w1[:, :, 0, 0])
    h = lrelu(gn(h, g1, b1))

    hp = jnp.pad(h, ((0, 0), (0, 0), (1, 1), (1, 1)), mode='reflect')
    Hh, Ww = h.shape[2], h.shape[3]
    acc = jnp.zeros_like(h)
    for kh in range(3):
        for kw in range(3):
            acc = acc + hp[:, :, kh:kh + Hh, kw:kw + Ww] * wdw[:, 0, kh, kw][None, :, None, None]
    h = lrelu(gn(acc + bdw[None, :, None, None], g2, b2))

    h = jnp.einsum('bchw,dc->bdhw', h, w3[:, :, 0, 0])
    h = gn(h, g3, b3)
    return h + x if use_res else h


if __name__ == "__main__":
    key = jax.random.PRNGKey(0)
    k_x, k_p = jax.random.split(key)

    B, C, Hs, Ws = 2, 4, 16, 16                 # in_ch == out_ch -> residual connection
    in_ch = out_ch = C
    x = jax.random.normal(k_x, (B, C, Hs, Ws), jnp.float32)   # NCHW, PyTorch convention
    params = make_params(k_p, in_ch, out_ch, expansion_ratio=2)
    use_res = (in_ch == out_ch)

    y = inverted_res_block(x, params, use_res=use_res)
    y = jax.block_until_ready(y)
    assert y.shape == (B, out_ch, Hs, Ws)

    # Correctness check against a pure-JAX implementation of the PyTorch module.
    y_ref = reference_forward(x, params, use_res)
    max_err = float(jnp.max(jnp.abs(y - y_ref)))
    assert max_err < 1e-3, f"mismatch vs reference: max abs err = {max_err}"

    print("KERNEL_OK")
</pallas_src>

<mosaic_0001>
module attributes {stable_mosaic.version = 11 : i64} {
  func.func @probe(%arg0: memref<8x128xf32, #tpu.memory_space<vmem>>, %arg1: memref<8x128xf32, #tpu.memory_space<vmem>>) attributes {dimension_semantics = [], scalar_prefetch = 0 : i64, scratch_operands = 0 : i64, tpu.core_type = #tpu.core_type<tc>} {
    %c0 = arith.constant 0 : index
    %c0_0 = arith.constant 0 : index
    %0 = vector.load %arg0[%c0, %c0_0] : memref<8x128xf32, #tpu.memory_space<vmem>>, vector<8x128xf32>
    %c1_i32 = arith.constant 1 : i32
    %1 = tpu.dynamic_rotate %0 by %c1_i32 dim 1 : vector<8x128xf32>, i32 -> vector<8x128xf32>
    %c0_1 = arith.constant 0 : index
    %c0_2 = arith.constant 0 : index
    %2 = vector.load %arg1[%c0_1, %c0_2] : memref<8x128xf32, #tpu.memory_space<vmem>>, vector<8x128xf32>
    tpu.vector_store %arg1[%c0_1, %c0_2], %1 {strides = array<i32>} : memref<8x128xf32, #tpu.memory_space<vmem>>, vector<8x128xf32>,
    return
  }
}

</mosaic_0001>

<bundles_post_ra>
// kernel: tpu_custom_call.1
= control target key start
LH: loop header
LB: loop body
LE: loop exit
PB: predicated region body
PF: predicated region fallthrough
CT: control target
= control target key end

     0   :  { %6 = vsyncpa [#allocation3], 0  ;;  %s128_s0 = inlined_call_operand.hbm [shape: f32[8,128], index: 0, kind: input, shape index: {}]   ;;  %s129_s1 = inlined_call_operand.hbm [shape: f32[8,128], index: 1, kind: output, shape index: {}]  }
   0x1   :  { %7 = vsyncpa [#allocation4], 0  ;;  %s91_s6 = smov [#allocation2]   ;;  %s43_s10 = scalar_lea.hbm %s128_s0, 128 }
   0x2   :  { %s14_s7 = sshll.u32 %s91_s6, 4  ;;  %p44_p0 = scmp.ne.s32.totalorder %s128_s0, %s43_s10  ;;  %s15_s7 = int_to_ptr.vmem [resolvable:$true] %s14_s7 }
   0x3   :  { %p47_p1 = scmp.lt.u32.totalorder %s43_s10, %s128_s0 }
   0x5   :  { %p49_p2 = pnand %p47_p1, %p44_p0 }
   0x7   :  { %52 = shalt.err (!%p49_p2)
}
   0x8   :  { %s53_s15 = scalar_lea.vmem %s15_s7, 128  ;;  %p58_p4 = scmp.lt.s32.totalorder %s15_s7, %s15_s7 }
   0x9   :  { %p54_p3 = scmp.ne.s32.totalorder %s15_s7, %s53_s15  ;;  %p59_p5 = scmp.lt.s32.totalorder %s53_s15, %s53_s15 }
   0xb   :  { %p60_p6 = por %p59_p5, %p58_p4 }
   0xd   :  { %p61_p7 = pnand %p60_p6, %p54_p3 }
   0xf   :  { %64 = shalt.err (!%p61_p7)
}
  0x10   :  { %17 = dma.hbm_to_vmem [thread:$0]  %s128_s0, 128, %s15_s7, [#allocation3]  }
  0x11   :  { %87 = dma.done.wait [#allocation3], 128  }
  0x12   :  { %88 = vsyncadd [#allocation3], 4294967168  ;;  %v21_v0 = vld [vmem:[#allocation2] sm:$0xff]  ;;  %s92_s18 = smov 1   ;;  %s93_s19 = smov [#allocation5]  }
  0x13   :  { %22 = vrot.lane.b32.xlu0 %v21_v0, %s92_s18  ;;  %s31_s20 = sshll.u32 %s93_s19, 4  ;;  %s32_s20 = int_to_ptr.vmem [resolvable:$true] %s31_s20 }
  0x14   :  { %s65_s21 = scalar_lea.vmem %s32_s20, 128  ;;  %p70_p9 = scmp.lt.s32.totalorder %s32_s20, %s32_s20 }
  0x15   :  { %p66_p8 = scmp.ne.s32.totalorder %s32_s20, %s65_s21  ;;  %p71_p10 = scmp.lt.s32.totalorder %s65_s21, %s65_s21 }
  0x17   :  { %p72_p11 = por %p71_p10, %p70_p9 }
  0x19   :  { %p73_p12 = pnand %p72_p11, %p66_p8 }
  0x85   :  { %v23_v1 = vpop.permute.xlu0 %22 }
  0x86   :  { %24 = vst [vmem:[#allocation5] sm:$0xff] %v23_v1 }
  0x87   :  { %76 = shalt.err (!%p73_p12)
}
  0x88   :  { %s77_s0 = scalar_lea.hbm %s129_s1, 128 }
  0x89   :  { %p78_p13 = scmp.ne.s32.totalorder %s129_s1, %s77_s0  ;;  %p81_p0 = scmp.lt.u32.totalorder %s77_s0, %s129_s1 }
  0x8b   :  { %p83_p1 = pnand %p81_p0, %p78_p13 }
  0x8d   :  { %86 = shalt.err (!%p83_p1)
}
  0x8e   :  { %34 = dma.vmem_to_hbm [thread:$0]  %s32_s20, 128, %s129_s1, [#allocation4]  }
  0x8f   :  { %89 = dma.done.wait [#allocation4], 128  }
  0x90   :  { %90 = vsyncadd [#allocation4], 4294967168 }
  0x91   :  { %38 = vsyncpa [#allocation3], 1 }
  0x92   :  { %39 = vsyncpa [#allocation4], 1 }

</bundles_post_ra>
